<compile_context>
chip_gen: v5e
topology: v5e:2x2
jax: 0.10.0
libtpu: 0.0.40
codegen_flags: <defaults>
</compile_context>

<pallas_src>
import jax
import jax.numpy as jnp
from jax.experimental import pallas as pl
from jax.experimental.pallas import tpu as pltpu


# --------------------------------------------------------------------------- #
# Kernel
# --------------------------------------------------------------------------- #
def siamese_bin_kernel(sc_ref, x1_ref, x2_ref, x3_ref, w1_ref, b1_ref, w2_ref,
                       out_ref, acc_ref):
    """Grid = (batch_tiles, k_tiles).

    sc_ref : (9,)  SMEM  [alpha, b2_0, b2_1, wl00, wl01, wl10, wl11, bl0, bl1]
    x*_ref : (TB, TK)    f32 input tiles (anchor / positive / negative)
    w1_ref : (TK, H)     bf16 first-layer weight tile
    b1_ref : (1, H), w2_ref : (H, 2)  f32, resident (Buffered(1))
    out_ref: (TB, 4)     packed [pos | neg]
    acc_ref: (3*TB, H)   f32 accumulator scratch
    """
    k = pl.program_id(1)
    tb = x1_ref.shape[0]

    @pl.when(k == 0)
    def _init():
        acc_ref[...] = jnp.zeros_like(acc_ref)

    # Stack the three tiles along the sublane axis (register/VMEM local) and
    # run ONE stacked bf16 MXU matmul with f32 accumulation.
    xs = jnp.concatenate([x1_ref[...], x2_ref[...], x3_ref[...]], axis=0)
    acc_ref[...] += jnp.dot(xs.astype(jnp.bfloat16), w1_ref[...],
                            preferred_element_type=jnp.float32)

    @pl.when(k == pl.num_programs(1) - 1)
    def _finalize():
        # Extractor tail: bias + ReLU + Linear(hidden, 2) (tiny, kept f32).
        h = jnp.maximum(acc_ref[...] + b1_ref[...], 0.0)          # (3*TB, H)
        f = jnp.dot(h, w2_ref[...],
                    preferred_element_type=jnp.float32)           # (3*TB, 2)

        # Packed SMEM scalars.
        a = sc_ref[0]
        b2_0, b2_1 = sc_ref[1], sc_ref[2]
        wl00, wl01, wl10, wl11 = sc_ref[3], sc_ref[4], sc_ref[5], sc_ref[6]
        bl0, bl1 = sc_ref[7], sc_ref[8]

        f0 = f[:, 0:1] + b2_0                                     # (3*TB, 1)
        f1 = f[:, 1:2] + b2_1
        # Shared single-parameter PReLU.
        f0 = jnp.maximum(f0, 0.0) + a * jnp.minimum(f0, 0.0)
        f1 = jnp.maximum(f1, 0.0) + a * jnp.minimum(f1, 0.0)

        o1_0, o1_1 = f0[0 * tb:1 * tb], f1[0 * tb:1 * tb]
        o2_0, o2_1 = f0[1 * tb:2 * tb], f1[1 * tb:2 * tb]
        o3_0, o3_1 = f0[2 * tb:3 * tb], f1[2 * tb:3 * tb]

        dp0 = jnp.abs(o2_0 - o1_0)
        dp1 = jnp.abs(o2_1 - o1_1)
        dn0 = jnp.abs(o3_0 - o1_0)
        dn1 = jnp.abs(o3_1 - o1_1)

        # Linear(2, 2) head on the VPU with scalar-broadcast FMAs.
        pos0 = dp0 * wl00 + dp1 * wl10 + bl0
        pos1 = dp0 * wl01 + dp1 * wl11 + bl1
        neg0 = dn0 * wl00 + dn1 * wl10 + bl0
        neg1 = dn0 * wl01 + dn1 * wl11 + bl1

        # Packed output slab [pos | neg] -> (TB, 4).
        # TODO(synk): if a bundle dump shows the 4-lane vst.msk store exposed
        # (only plausible for tiny d_in), accumulate several tiles into a
        # lane-denser slab before writeback.
        out_ref[...] = jnp.concatenate([pos0, pos1, neg0, neg1], axis=1)


# --------------------------------------------------------------------------- #
# Tiling / wrapper helpers
# --------------------------------------------------------------------------- #
def _round_up(x, m):
    return ((x + m - 1) // m) * m


def _vmem_limit_bytes():
    """~75% of physical VMEM: 96 MiB on 128-MiB chips, 48 MiB on v7x (64 MiB)."""
    cap = 64 * 1024 * 1024  # conservative default (v7x per-TensorCore VMEM)
    try:
        cap = int(pltpu.get_tpu_info().vmem_capacity_bytes)
    except Exception:
        pass
    return min((cap * 3) // 4, 112 * 1024 * 1024)


def _choose_tk(d_in, tk_cap=512):
    """K tile: multiple of 128 dividing d_in, else the full d_in."""
    if d_in <= tk_cap:
        return d_in
    if d_in % 128 == 0:
        best = None
        for m in range(128, tk_cap + 1, 128):
            if d_in % m == 0:
                best = m
        if best is not None:
            return best
    # TODO(synk): d_in not 128-divisible and larger than the cap -> K axis is
    # left untiled (single K step); pad d_in upstream if this overflows VMEM.
    return d_in


def _choose_tb(B, hidden, TK, vmem_limit, tb_max):
    """Batch tile: multiple of 8, sized from the VMEM budget, minimal padding."""
    budget = int(vmem_limit * 0.85)
    fixed = 2 * TK * hidden * 2        # bf16 w1 tile, double-buffered
    fixed += 2 * 8 * max(hidden, 128) * 4   # padded b1 / w2 resident tiles
    fixed += 256 * 1024                # slack (semaphores, small buffers)
    per_row = 3 * 2 * TK * 4 + 3 * hidden * 4 + 2 * 4 * 4  # inputs + acc + out
    cap = max(8, (budget - fixed) // per_row)
    cap = min(cap, tb_max)
    cap = max((cap // 8) * 8, 8)

    bp8 = _round_up(B, 8)
    if bp8 <= cap:
        # Prefer >=2 batch tiles when it costs nothing (v7x megacore + DMA overlap).
        if bp8 >= 16 and bp8 % 16 == 0:
            return bp8 // 2
        return bp8

    # Pick TB <= cap (multiple of 8) minimizing batch padding; prefer larger TB.
    best_tb, best_pad = None, None
    for tb in range(cap, 7, -8):
        pad = _round_up(B, tb) - B
        if best_pad is None or pad < best_pad:
            best_tb, best_pad = tb, pad
    return best_tb


# --------------------------------------------------------------------------- #
# Public forward
# --------------------------------------------------------------------------- #
def siamese_net_bin(x1, x2, x3, params, *, tb_max=2048, tk_cap=512):
    """x1, x2, x3: (B, C, H, W) float32 NCHW images -> (pos, neg), each (B, 2)."""
    B, C, H, W = x1.shape
    d_in = C * H * W
    hidden = params["w1"].shape[1]

    vmem_limit = _vmem_limit_bytes()
    TK = _choose_tk(d_in, tk_cap)
    TB = _choose_tb(B, hidden, TK, vmem_limit, tb_max)
    Bp = _round_up(B, TB)
    n_b = Bp // TB
    n_k = d_in // TK

    def prep(x):
        xf = x.reshape(B, d_in)  # contiguous NCHW flatten: a view, no HBM copy
        if Bp != B:
            # TODO(synk): ragged last tile is padded (<= a few rows with the
            # TB selection above) rather than masked in-kernel.
            xf = jnp.pad(xf, ((0, Bp - B), (0, 0)))
        return xf

    x1f, x2f, x3f = prep(x1), prep(x2), prep(x3)

    # bf16 weights for the MXU (f32 accumulation in-kernel).
    w1_bf = params["w1"].astype(jnp.bfloat16)

    # Pack all tiny parameters into one SMEM scalar array:
    # [alpha, b2_0, b2_1, wl00, wl01, wl10, wl11, bl0, bl1]
    scalars = jnp.concatenate([
        params["alpha"].reshape(-1)[:1],
        params["b2"].reshape(-1),
        params["wl"].reshape(-1),
        params["bl"].reshape(-1),
    ]).astype(jnp.float32)

    if n_k == 1:
        w1_spec = pl.BlockSpec((TK, hidden), lambda i, k: (k, 0),
                               pipeline_mode=pl.Buffered(1))
    else:
        w1_spec = pl.BlockSpec((TK, hidden), lambda i, k: (k, 0))

    flops = 2 * 3 * Bp * d_in * hidden + 2 * 3 * Bp * hidden * 2 + 24 * Bp
    bytes_accessed = (3 * Bp * d_in * 4              # f32 input tiles
                      + n_b * d_in * hidden * 2      # bf16 w1, re-streamed per batch tile
                      + hidden * 4 + hidden * 2 * 4  # b1, w2
                      + Bp * 4 * 4 + 9 * 4)          # output + scalars

    out = pl.pallas_call(
        siamese_bin_kernel,
        out_shape=jax.ShapeDtypeStruct((Bp, 4), jnp.float32),
        grid=(n_b, n_k),
        in_specs=[
            pl.BlockSpec(memory_space=pltpu.MemorySpace.SMEM),   # packed scalars (9,)
            pl.BlockSpec((TB, TK), lambda i, k: (i, k)),         # x1 tile
            pl.BlockSpec((TB, TK), lambda i, k: (i, k)),         # x2 tile
            pl.BlockSpec((TB, TK), lambda i, k: (i, k)),         # x3 tile
            w1_spec,                                             # w1 (TK, hidden) bf16
            pl.BlockSpec((1, hidden), lambda i, k: (0, 0),
                         pipeline_mode=pl.Buffered(1)),          # b1 (resident)
            pl.BlockSpec((hidden, 2), lambda i, k: (0, 0),
                         pipeline_mode=pl.Buffered(1)),          # w2 (resident)
        ],
        out_specs=pl.BlockSpec((TB, 4), lambda i, k: (i, 0)),
        scratch_shapes=[pltpu.VMEM((3 * TB, hidden), jnp.float32)],
        compiler_params=pltpu.CompilerParams(
            # TODO(synk): on v7x confirm in xprof that the batch axis shards
            # across both TensorCores; switch to pltpu.CORE_PARALLEL if not.
            dimension_semantics=("parallel", "arbitrary"),
            vmem_limit_bytes=vmem_limit,
        ),
        cost_estimate=pl.CostEstimate(
            flops=flops, transcendentals=0, bytes_accessed=bytes_accessed),
    )(scalars, x1f, x2f, x3f, w1_bf, params["b1"], params["w2"])

    pos = out[:B, 0:2]
    neg = out[:B, 2:4]
    return pos, neg


# --------------------------------------------------------------------------- #
# Params / reference
# --------------------------------------------------------------------------- #
def init_params(key, d_in, hidden):
    k1, k2, k3, k4, k5, k6 = jax.random.split(key, 6)
    return {
        # extractor: Linear(d_in, hidden) -> ReLU -> Linear(hidden, 2)
        "w1": (jax.random.normal(k1, (d_in, hidden), jnp.float32)
               * (1.0 / jnp.sqrt(d_in))),
        "b1": jax.random.normal(k2, (1, hidden), jnp.float32) * 0.01,
        "w2": (jax.random.normal(k3, (hidden, 2), jnp.float32)
               * (1.0 / jnp.sqrt(hidden))),
        "b2": jax.random.normal(k4, (1, 2), jnp.float32) * 0.01,
        # PReLU: single learnable alpha (nn.PReLU() default init = 0.25)
        "alpha": jnp.full((1,), 0.25, jnp.float32),
        # head: Linear(2, 2)  (math layout: y = x @ wl + bl)
        "wl": jax.random.normal(k5, (2, 2), jnp.float32) * 0.5,
        "bl": jax.random.normal(k6, (1, 2), jnp.float32) * 0.01,
    }


def reference_forward(x1, x2, x3, params, *, match_kernel_precision=True):
    """Pure-JAX reference; optionally mirrors the kernel's bf16 first matmul."""
    B = x1.shape[0]
    d_in = x1.shape[1] * x1.shape[2] * x1.shape[3]
    w1 = params["w1"].astype(jnp.bfloat16) if match_kernel_precision else params["w1"]

    def extract(x):
        xf = x.reshape(B, d_in)
        if match_kernel_precision:
            xf = xf.astype(jnp.bfloat16)
        h = jnp.dot(xf, w1, preferred_element_type=jnp.float32) + params["b1"]
        h = jnp.maximum(h, 0.0)
        f = jnp.dot(h, params["w2"],
                    preferred_element_type=jnp.float32) + params["b2"]
        a = params["alpha"][0]
        return jnp.maximum(f, 0.0) + a * jnp.minimum(f, 0.0)

    o1, o2, o3 = extract(x1), extract(x2), extract(x3)
    pos = jnp.abs(o2 - o1) @ params["wl"] + params["bl"]
    neg = jnp.abs(o3 - o1) @ params["wl"] + params["bl"]
    return pos, neg


# --------------------------------------------------------------------------- #
# Demo
# --------------------------------------------------------------------------- #
if __name__ == "__main__":
    B, C, H, W = 2, 4, 16, 16
    HIDDEN = 32
    D_IN = C * H * W

    key = jax.random.PRNGKey(0)
    kp, kx1, kx2, kx3 = jax.random.split(key, 4)

    params = init_params(kp, D_IN, HIDDEN)
    x1 = jax.random.normal(kx1, (B, C, H, W), jnp.float32)
    x2 = jax.random.normal(kx2, (B, C, H, W), jnp.float32)
    x3 = jax.random.normal(kx3, (B, C, H, W), jnp.float32)

    fwd = jax.jit(siamese_net_bin)
    pos, neg = fwd(x1, x2, x3, params)
    jax.block_until_ready((pos, neg))

    # Matched-precision reference (bf16 MXU inputs, f32 accumulation).
    pos_ref, neg_ref = reference_forward(x1, x2, x3, params,
                                         match_kernel_precision=True)
    assert pos.shape == (B, 2) and neg.shape == (B, 2)
    assert jnp.allclose(pos, pos_ref, atol=1e-2, rtol=1e-2), (pos, pos_ref)
    assert jnp.allclose(neg, neg_ref, atol=1e-2, rtol=1e-2), (neg, neg_ref)

    print("KERNEL_OK")
</pallas_src>

<mosaic_0001>
module attributes {stable_mosaic.version = 11 : i64} {
  func.func @siamese_bin_kernel(%arg0: i32, %arg1: i32, %arg2: memref<9xf32, #tpu.memory_space<smem>>, %arg3: memref<8x512xf32, #tpu.memory_space<vmem>>, %arg4: memref<8x512xf32, #tpu.memory_space<vmem>>, %arg5: memref<8x512xf32, #tpu.memory_space<vmem>>, %arg6: memref<512x32xbf16, #tpu.memory_space<vmem>>, %arg7: memref<1x32xf32, #tpu.memory_space<vmem>>, %arg8: memref<32x2xf32, #tpu.memory_space<vmem>>, %arg9: memref<8x4xf32, #tpu.memory_space<vmem>>, %arg10: memref<24x32xf32, #tpu.memory_space<vmem>>) attributes {dimension_semantics = [#tpu.dimension_semantics<parallel>, #tpu.dimension_semantics<arbitrary>], iteration_bounds = array<i64: 1, 2>, scalar_prefetch = 0 : i64, scratch_operands = 1 : i64, tpu.core_type = #tpu.core_type<tc>, window_params = [{transform_indices = @transform_0, window_bounds = array<i64: 9>}, {transform_indices = @transform_1, window_bounds = array<i64: 8, 512>}, {transform_indices = @transform_2, window_bounds = array<i64: 8, 512>}, {transform_indices = @transform_3, window_bounds = array<i64: 8, 512>}, {transform_indices = @transform_4, window_bounds = array<i64: 512, 32>}, {pipeline_mode = #tpu.pipeline_mode<synchronous>, transform_indices = @transform_5, window_bounds = array<i64: 1, 32>}, {pipeline_mode = #tpu.pipeline_mode<synchronous>, transform_indices = @transform_6, window_bounds = array<i64: 32, 2>}, {transform_indices = @transform_7, window_bounds = array<i64: 8, 4>}]} {
    %c0_i32 = arith.constant 0 : i32
    %0 = arith.cmpi eq, %arg1, %c0_i32 : i32
    %1 = arith.extui %0 : i1 to i32
    %c0_i32_0 = arith.constant 0 : i32
    %2 = arith.cmpi ne, %1, %c0_i32_0 : i32
    scf.if %2 {
      %cst_13 = arith.constant 0.000000e+00 : f32
      %16 = vector.broadcast %cst_13 : f32 to vector<24x32xf32>
      %c0_14 = arith.constant 0 : index
      %c0_15 = arith.constant 0 : index
      %17 = vector.load %arg10[%c0_14, %c0_15] : memref<24x32xf32, #tpu.memory_space<vmem>>, vector<24x32xf32>
      tpu.vector_store %arg10[%c0_14, %c0_15], %16 {strides = array<i32>} : memref<24x32xf32, #tpu.memory_space<vmem>>, vector<24x32xf32>,
    } else {
    }
    %c0 = arith.constant 0 : index
    %c0_1 = arith.constant 0 : index
    %3 = vector.load %arg3[%c0, %c0_1] : memref<8x512xf32, #tpu.memory_space<vmem>>, vector<8x512xf32>
    %c0_2 = arith.constant 0 : index
    %c0_3 = arith.constant 0 : index
    %4 = vector.load %arg4[%c0_2, %c0_3] : memref<8x512xf32, #tpu.memory_space<vmem>>, vector<8x512xf32>
    %c0_4 = arith.constant 0 : index
    %c0_5 = arith.constant 0 : index
    %5 = vector.load %arg5[%c0_4, %c0_5] : memref<8x512xf32, #tpu.memory_space<vmem>>, vector<8x512xf32>
    %6 = tpu.concatenate %3, %4, %5 in 0 : vector<8x512xf32>, vector<8x512xf32>, vector<8x512xf32> -> vector<24x512xf32>
    %c0_6 = arith.constant 0 : index
    %c0_7 = arith.constant 0 : index
    %7 = vector.load %arg10[%c0_6, %c0_7] : memref<24x32xf32, #tpu.memory_space<vmem>>, vector<24x32xf32>
    %8 = arith.truncf %6 : vector<24x512xf32> to vector<24x512xbf16>
    %c0_8 = arith.constant 0 : index
    %c0_9 = arith.constant 0 : index
    %9 = vector.load %arg6[%c0_8, %c0_9] : memref<512x32xbf16, #tpu.memory_space<vmem>>, vector<512x32xbf16>
    %cst = arith.constant dense<0.000000e+00> : vector<24x32xf32>
    %10 = tpu.matmul %8, %9, %cst {dimension_numbers = #tpu.dot_dimension_numbers<[1], [0], [0], [1], [0, 0, 1, 1], [], []>} : vector<24x512xbf16>, vector<512x32xbf16>, vector<24x32xf32> -> vector<24x32xf32>
    %11 = arith.addf %7, %10 : vector<24x32xf32>
    %c0_10 = arith.constant 0 : index
    %c0_11 = arith.constant 0 : index
    %12 = vector.load %arg10[%c0_10, %c0_11] : memref<24x32xf32, #tpu.memory_space<vmem>>, vector<24x32xf32>
    tpu.vector_store %arg10[%c0_10, %c0_11], %11 {strides = array<i32>} : memref<24x32xf32, #tpu.memory_space<vmem>>, vector<24x32xf32>,
    %c1_i32 = arith.constant 1 : i32
    %13 = arith.cmpi eq, %arg1, %c1_i32 : i32
    %14 = arith.extui %13 : i1 to i32
    %c0_i32_12 = arith.constant 0 : i32
    %15 = arith.cmpi ne, %14, %c0_i32_12 : i32
    scf.if %15 {
      %c0_13 = arith.constant 0 : index
      %c0_14 = arith.constant 0 : index
      %16 = vector.load %arg10[%c0_13, %c0_14] : memref<24x32xf32, #tpu.memory_space<vmem>>, vector<24x32xf32>
      %c0_15 = arith.constant 0 : index
      %c0_16 = arith.constant 0 : index
      %17 = vector.load %arg7[%c0_15, %c0_16] : memref<1x32xf32, #tpu.memory_space<vmem>>, vector<1x32xf32>
      %18 = vector.broadcast %17 : vector<1x32xf32> to vector<24x32xf32>
      %19 = arith.addf %16, %18 : vector<24x32xf32>
      %cst_17 = arith.constant 0.000000e+00 : f32
      %20 = vector.broadcast %cst_17 : f32 to vector<24x32xf32>
      %21 = arith.maximumf %19, %20 : vector<24x32xf32>
      %c0_18 = arith.constant 0 : index
      %c0_19 = arith.constant 0 : index
      %22 = vector.load %arg8[%c0_18, %c0_19] : memref<32x2xf32, #tpu.memory_space<vmem>>, vector<32x2xf32>
      %cst_20 = arith.constant dense<0.000000e+00> : vector<24x2xf32>
      %23 = tpu.matmul %21, %22, %cst_20 {dimension_numbers = #tpu.dot_dimension_numbers<[1], [0], [0], [1], [0, 0, 1, 1], [], []>} : vector<24x32xf32>, vector<32x2xf32>, vector<24x2xf32> -> vector<24x2xf32>
      %c0_21 = arith.constant 0 : index
      %24 = memref.load %arg2[%c0_21] : memref<9xf32, #tpu.memory_space<smem>>
      %c1 = arith.constant 1 : index
      %25 = memref.load %arg2[%c1] : memref<9xf32, #tpu.memory_space<smem>>
      %c2 = arith.constant 2 : index
      %26 = memref.load %arg2[%c2] : memref<9xf32, #tpu.memory_space<smem>>
      %c3 = arith.constant 3 : index
      %27 = memref.load %arg2[%c3] : memref<9xf32, #tpu.memory_space<smem>>
      %c4 = arith.constant 4 : index
      %28 = memref.load %arg2[%c4] : memref<9xf32, #tpu.memory_space<smem>>
      %c5 = arith.constant 5 : index
      %29 = memref.load %arg2[%c5] : memref<9xf32, #tpu.memory_space<smem>>
      %c6 = arith.constant 6 : index
      %30 = memref.load %arg2[%c6] : memref<9xf32, #tpu.memory_space<smem>>
      %c7 = arith.constant 7 : index
      %31 = memref.load %arg2[%c7] : memref<9xf32, #tpu.memory_space<smem>>
      %c8 = arith.constant 8 : index
      %32 = memref.load %arg2[%c8] : memref<9xf32, #tpu.memory_space<smem>>
      %33 = vector.extract_strided_slice %23 {offsets = [0, 0], sizes = [24, 1], strides = [1, 1]} : vector<24x2xf32> to vector<24x1xf32>
      %34 = vector.broadcast %25 : f32 to vector<24x1xf32>
      %35 = arith.addf %33, %34 : vector<24x1xf32>
      %36 = vector.extract_strided_slice %23 {offsets = [0, 1], sizes = [24, 1], strides = [1, 1]} : vector<24x2xf32> to vector<24x1xf32>
      %37 = vector.broadcast %26 : f32 to vector<24x1xf32>
      %38 = arith.addf %36, %37 : vector<24x1xf32>
      %cst_22 = arith.constant 0.000000e+00 : f32
      %39 = vector.broadcast %cst_22 : f32 to vector<24x1xf32>
      %40 = arith.maximumf %35, %39 : vector<24x1xf32>
      %cst_23 = arith.constant 0.000000e+00 : f32
      %41 = vector.broadcast %cst_23 : f32 to vector<24x1xf32>
      %42 = arith.minimumf %35, %41 : vector<24x1xf32>
      %43 = vector.broadcast %24 : f32 to vector<24x1xf32>
      %44 = arith.mulf %43, %42 : vector<24x1xf32>
      %45 = arith.addf %40, %44 : vector<24x1xf32>
      %cst_24 = arith.constant 0.000000e+00 : f32
      %46 = vector.broadcast %cst_24 : f32 to vector<24x1xf32>
      %47 = arith.maximumf %38, %46 : vector<24x1xf32>
      %cst_25 = arith.constant 0.000000e+00 : f32
      %48 = vector.broadcast %cst_25 : f32 to vector<24x1xf32>
      %49 = arith.minimumf %38, %48 : vector<24x1xf32>
      %50 = vector.broadcast %24 : f32 to vector<24x1xf32>
      %51 = arith.mulf %50, %49 : vector<24x1xf32>
      %52 = arith.addf %47, %51 : vector<24x1xf32>
      %53 = vector.extract_strided_slice %45 {offsets = [0, 0], sizes = [8, 1], strides = [1, 1]} : vector<24x1xf32> to vector<8x1xf32>
      %54 = vector.extract_strided_slice %52 {offsets = [0, 0], sizes = [8, 1], strides = [1, 1]} : vector<24x1xf32> to vector<8x1xf32>
      %55 = vector.extract_strided_slice %45 {offsets = [8, 0], sizes = [8, 1], strides = [1, 1]} : vector<24x1xf32> to vector<8x1xf32>
      %56 = vector.extract_strided_slice %52 {offsets = [8, 0], sizes = [8, 1], strides = [1, 1]} : vector<24x1xf32> to vector<8x1xf32>
      %57 = vector.extract_strided_slice %45 {offsets = [16, 0], sizes = [8, 1], strides = [1, 1]} : vector<24x1xf32> to vector<8x1xf32>
      %58 = vector.extract_strided_slice %52 {offsets = [16, 0], sizes = [8, 1], strides = [1, 1]} : vector<24x1xf32> to vector<8x1xf32>
      %59 = arith.subf %55, %53 : vector<8x1xf32>
      %60 = math.absf %59 : vector<8x1xf32>
      %61 = arith.subf %56, %54 : vector<8x1xf32>
      %62 = math.absf %61 : vector<8x1xf32>
      %63 = arith.subf %57, %53 : vector<8x1xf32>
      %64 = math.absf %63 : vector<8x1xf32>
      %65 = arith.subf %58, %54 : vector<8x1xf32>
      %66 = math.absf %65 : vector<8x1xf32>
      %67 = vector.broadcast %27 : f32 to vector<8x1xf32>
      %68 = arith.mulf %60, %67 : vector<8x1xf32>
      %69 = vector.broadcast %29 : f32 to vector<8x1xf32>
      %70 = arith.mulf %62, %69 : vector<8x1xf32>
      %71 = arith.addf %68, %70 : vector<8x1xf32>
      %72 = vector.broadcast %31 : f32 to vector<8x1xf32>
      %73 = arith.addf %71, %72 : vector<8x1xf32>
      %74 = vector.broadcast %28 : f32 to vector<8x1xf32>
      %75 = arith.mulf %60, %74 : vector<8x1xf32>
      %76 = vector.broadcast %30 : f32 to vector<8x1xf32>
      %77 = arith.mulf %62, %76 : vector<8x1xf32>
      %78 = arith.addf %75, %77 : vector<8x1xf32>
      %79 = vector.broadcast %32 : f32 to vector<8x1xf32>
      %80 = arith.addf %78, %79 : vector<8x1xf32>
      %81 = vector.broadcast %27 : f32 to vector<8x1xf32>
      %82 = arith.mulf %64, %81 : vector<8x1xf32>
      %83 = vector.broadcast %29 : f32 to vector<8x1xf32>
      %84 = arith.mulf %66, %83 : vector<8x1xf32>
      %85 = arith.addf %82, %84 : vector<8x1xf32>
      %86 = vector.broadcast %31 : f32 to vector<8x1xf32>
      %87 = arith.addf %85, %86 : vector<8x1xf32>
      %88 = vector.broadcast %28 : f32 to vector<8x1xf32>
      %89 = arith.mulf %64, %88 : vector<8x1xf32>
      %90 = vector.broadcast %30 : f32 to vector<8x1xf32>
      %91 = arith.mulf %66, %90 : vector<8x1xf32>
      %92 = arith.addf %89, %91 : vector<8x1xf32>
      %93 = vector.broadcast %32 : f32 to vector<8x1xf32>
      %94 = arith.addf %92, %93 : vector<8x1xf32>
      %95 = tpu.concatenate %73, %80, %87, %94 in 1 : vector<8x1xf32>, vector<8x1xf32>, vector<8x1xf32>, vector<8x1xf32> -> vector<8x4xf32>
      %c0_26 = arith.constant 0 : index
      %c0_27 = arith.constant 0 : index
      %96 = vector.load %arg9[%c0_26, %c0_27] : memref<8x4xf32, #tpu.memory_space<vmem>>, vector<8x4xf32>
      tpu.vector_store %arg9[%c0_26, %c0_27], %95 {strides = array<i32>} : memref<8x4xf32, #tpu.memory_space<vmem>>, vector<8x4xf32>,
    } else {
    }
    return
  }
  func.func @transform_0(%arg0: i32, %arg1: i32) -> i32 {
    %c0_i32 = arith.constant 0 : i32
    %c0_i32_0 = arith.constant 0 : i32
    return %c0_i32 : i32
  }
  func.func @transform_1(%arg0: i32, %arg1: i32) -> (i32, i32) {
    %c0_i32 = arith.constant 0 : i32
    return %arg0, %arg1 : i32, i32
  }
  func.func @transform_2(%arg0: i32, %arg1: i32) -> (i32, i32) {
    %c0_i32 = arith.constant 0 : i32
    return %arg0, %arg1 : i32, i32
  }
  func.func @transform_3(%arg0: i32, %arg1: i32) -> (i32, i32) {
    %c0_i32 = arith.constant 0 : i32
    return %arg0, %arg1 : i32, i32
  }
  func.func @transform_4(%arg0: i32, %arg1: i32) -> (i32, i32) {
    %c0_i32 = arith.constant 0 : i32
    %c0_i32_0 = arith.constant 0 : i32
    return %arg1, %c0_i32 : i32, i32
  }
  func.func @transform_5(%arg0: i32, %arg1: i32) -> (i32, i32) {
    %c0_i32 = arith.constant 0 : i32
    %c0_i32_0 = arith.constant 0 : i32
    %c0_i32_1 = arith.constant 0 : i32
    return %c0_i32, %c0_i32_0 : i32, i32
  }
  func.func @transform_6(%arg0: i32, %arg1: i32) -> (i32, i32) {
    %c0_i32 = arith.constant 0 : i32
    %c0_i32_0 = arith.constant 0 : i32
    %c0_i32_1 = arith.constant 0 : i32
    return %c0_i32, %c0_i32_0 : i32, i32
  }
  func.func @transform_7(%arg0: i32, %arg1: i32) -> (i32, i32) {
    %c0_i32 = arith.constant 0 : i32
    %c0_i32_0 = arith.constant 0 : i32
    return %arg0, %c0_i32 : i32, i32
  }
}

</mosaic_0001>

<bundles_post_ra>
// kernel: siamese_net_bin.1
= control target key start
LH: loop header
LB: loop body
LE: loop exit
PB: predicated region body
PF: predicated region fallthrough
CT: control target
= control target key end

     0   :  { %12 = vsyncpa [#allocation4], 0  ;;  %s1396_s24 = smov 0   ;;  %s1398_s25 = smov 0   ;;  %s1527_s0 = inlined_call_operand.vmem [shape: f32[9], index: 0, kind: input, shape index: {}]   ;;  %s1528_s1 = inlined_call_operand.vmem [shape: f32[8,1024], index: 1, kind: input, shape index: {}]   ;;  %s1529_s2 = inlined_call_operand.vmem [shape: f32[8,1024], index: 2, kind: input, shape index: {}]   ;;  %s1530_s3 = inlined_call_operand.vmem [shape: f32[8,1024], index: 3, kind: input, shape index: {}]   ;;  %s1531_s4 = inlined_call_operand.vmem [shape: bf16[1024,32], index: 4, kind: input, shape index: {}]   ;;  %s1532_s5 = inlined_call_operand.vmem [shape: f32[1,32], index: 5, kind: input, shape index: {}]   ;;  %s1533_s6 = inlined_call_operand.vmem [shape: f32[32,2], index: 6, kind: input, shape index: {}]   ;;  %s1534_s7 = inlined_call_operand.vmem [shape: f32[8,4], index: 7, kind: output, shape index: {}]  }
   0x1   :  { %s1400_s26 = smov 0  }
   0x2 LB: > { %s1068_s27 = sadd.s32 4294967295, %s1348_s26   ;;  %s27_s28 = sadd.s32 1, %s1344_s25  ;;  %s1348_s26 = sphi %s1400_s26, %s18_s26   ;;  %s1344_s25 = sphi %s1398_s25, %s1536_s25   ;;  %s1340_s24 = sphi %s1396_s24, %s1535_s24  }
   0x3   : > { %p28_p0 = scmp.ge.s32.totalorder %s27_s28, 2  ;;  %p1069_p1 = scmp.ge.s32.totalorder %s1348_s26, 1 }
   0x4   : > { %p234_p2 = scmp.lt.s32.totalorder %s1348_s26, 3  ;;  %p1274_p4 = scmp.eq.s32.totalorder %s1068_s27, 0 }
   0x5   : > { %s1538_s28 = smov (%p28_p0, %s27_s28), 0  ;;  %s246_s8 = sshll.u32 %s1527_s0, 4  ;;  %s247_s8 = int_to_ptr.vmem [resolvable:$true] %s246_s8 }
   0x6   : > { %p235_p3 = pnand %p1069_p1, %p234_p2  ;;  %s1350_s9 = smov [#allocation3]  }
   0x8   : > { %p1270_p5 = pneg %p235_p3  ;;  %313 = sbr.rel (%p235_p3) target bundleno = 614 (0x266), region = 48 }
   0xa   : > { %p1271_p6 = pnand %p1274_p4, %p1270_p5 }
   0xc   : > { %1273 = dma.vmem_to_smem (!%p1271_p6), %s247_s8, 16, %s1350_s9, [#allocation4]  }
   0xd   : > { %1335 = dma.done.wait (%p1274_p4), [#allocation4], 16  }
   0xe   : > { %1337 = vsyncadd (%p1274_p4), [#allocation4], 4294967280 }
   0xf   : > { %320 = sfence }
  0x10   : > { %s1074_s10 = sshll.u32 %s1340_s24, 2  ;;  %s1080_s11 = sshll.u32 %s1340_s24, 6 }
  0x11   : > { %p376_p7 = scmp.lt.s32.totalorder %s1074_s10, 7  ;;  %p404_p8 = scmp.lt.s32.totalorder %s1080_s11, 127 }
  0x12   : > { %p1082_p9 = scmp.ne.s32.totalorder %s1340_s24, 0 }
  0x13   : > { %s1540_s10 = smov (!%p376_p7, %s1074_s10), 7  ;;  %s1542_s11 = smov (!%p404_p8, %s1080_s11), 127 }
  0x14   : > { %s1075_s12 = sshll.u32 %s1540_s10, 3  ;;  %s1081_s22 = sshll.u32 %s1542_s11, 2 }
  0x15   : > { %s1425_s15 = scalar_lea.vmem %s1528_s1, %s1075_s12  ;;  %s1430_s18 = scalar_lea.vmem %s1529_s2, %s1075_s12 }
  0x16   : > { %s1435_s21 = scalar_lea.vmem %s1530_s3, %s1075_s12  ;;  %s1440_s29 = scalar_lea.vmem %s1531_s4, %s1081_s22 }
  0x17   : > { %416 = sbr.rel (%p1082_p9) target bundleno = 32 (0x20), region = 56 }
  0x1c   : > { %vm417_vm0 = vcmask 261120   ;;  %v1351_v0 = vmov 0.0  }
  0x1d   : > { %418 = vst.msk [vmem:[#allocation2] sm:$0xff] %vm417_vm0, %v1351_v0 }
  0x1e   : > { %419 = vst.msk [vmem:[#allocation2 + $0x8] sm:$0xff] %vm417_vm0, %v1351_v0 }
  0x1f   : > { %420 = vst.msk [vmem:[#allocation2 + $0x10] sm:$0xff] %vm417_vm0, %v1351_v0 }
  0x20 PF: > { %v1233_v1 = vld [vmem:[%s1440_s29 + $0x38] sm:$0xff]  ;;  %v1232_v5 = vld [vmem:[%s1440_s29 + $0x30] sm:$0xff]  ;;  %v1231_v9 = vld [vmem:[%s1440_s29 + $0x28] sm:$0xff]  ;;  %vm775_vm1 = vcmask 261120   ;;  %p1211_p10 = scmp.ne.s32.totalorder %s1340_s24, 1 }
  0x21   : > { %v1241_v2 = vld [vmem:[%s1440_s29 + $0x78] sm:$0xff]  ;;  %700 = vmatpush.bf16.msra.mxu0 %v1233_v1  ;;  %v1240_v6 = vld [vmem:[%s1440_s29 + $0x70] sm:$0xff]  ;;  %v1239_v10 = vld [vmem:[%s1440_s29 + $0x68] sm:$0xff]  ;;  %s1216_s16 = sld [smem:[#allocation3 + $0x2]] (!%p1211_p10)  ;;  %s1352_s22 = smov (!%p1211_p10), 127  }
  0x22   : > { %v1249_v3 = vld [vmem:[%s1440_s29 + $0xb8] sm:$0xff]  ;;  %718 = vmatpush.bf16.msra.mxu1 %v1241_v2  ;;  %v1248_v7 = vld [vmem:[%s1440_s29 + $0xb0] sm:$0xff]  ;;  %v1247_v11 = vld [vmem:[%s1440_s29 + $0xa8] sm:$0xff]  ;;  %s1215_s17 = sld [smem:[#allocation3 + $0x1]] (!%p1211_p10)  ;;  %s1353_s30 = smov (!%p1211_p10), 1  }
  0x23   : > { %v1257_v4 = vld [vmem:[%s1440_s29 + $0xf8] sm:$0xff]  ;;  %736 = vmatpush.bf16.msra.mxu2 %v1249_v3  ;;  %v1256_v8 = vld [vmem:[%s1440_s29 + $0xf0] sm:$0xff]  ;;  %v1255_v12 = vld [vmem:[%s1440_s29 + $0xe8] sm:$0xff]  ;;  %s1509_s19 = sld [smem:[#allocation3 + $0x6]] (!%p1211_p10)  ;;  %s1354_s8 = smov (!%p1211_p10), 3  }
  0x24   : > { %754 = vmatpush.bf16.msra.mxu3 %v1257_v4  ;;  %v1230_v13 = vld [vmem:[%s1440_s29 + $0x20] sm:$0xff]  ;;  %v1229_v17 = vld [vmem:[%s1440_s29 + $0x18] sm:$0xff]  ;;  %v1228_v21 = vld [vmem:[%s1440_s29 + $0x10] sm:$0xff]  ;;  %s1511_s20 = sld [smem:[#allocation3 + $0x3]] (!%p1211_p10)  ;;  %s1355_s9 = smov (!%p1211_p10), 2  }
  0x25   : > { %701 = vmatpush.bf16.msra.mxu0 %v1232_v5  ;;  %v1238_v14 = vld [vmem:[%s1440_s29 + $0x60] sm:$0xff]  ;;  %v1237_v18 = vld [vmem:[%s1440_s29 + $0x58] sm:$0xff]  ;;  %v1236_v22 = vld [vmem:[%s1440_s29 + $0x50] sm:$0xff]  ;;  %s1218_s23 = sld [smem:[#allocation3 + $0x4]] (!%p1211_p10) }
  0x26   : > { %719 = vmatpush.bf16.msra.mxu1 %v1240_v6  ;;  %v1246_v15 = vld [vmem:[%s1440_s29 + $0xa0] sm:$0xff]  ;;  %v1245_v19 = vld [vmem:[%s1440_s29 + $0x98] sm:$0xff]  ;;  %v1244_v23 = vld [vmem:[%s1440_s29 + $0x90] sm:$0xff]  ;;  %s1222_s27 = sld [smem:[#allocation3 + $0x8]] (!%p1211_p10) }
  0x27   : > { %737 = vmatpush.bf16.msra.mxu2 %v1248_v7  ;;  %v1254_v16 = vld [vmem:[%s1440_s29 + $0xe0] sm:$0xff]  ;;  %v1253_v20 = vld [vmem:[%s1440_s29 + $0xd8] sm:$0xff]  ;;  %v1252_v24 = vld [vmem:[%s1440_s29 + $0xd0] sm:$0xff] }
  0x28   : > { %755 = vmatpush.bf16.msra.mxu3 %v1256_v8  ;;  %v1227_v25 = vld [vmem:[%s1440_s29 + $0x8] sm:$0xff]  ;;  %v1226_v29 = vld [vmem:[%s1440_s29] sm:$0xff]  ;;  %v423_v37 = vld [vmem:[%s1425_s15 + $0x10] sm:$0xff] }
  0x29   : > { %702 = vmatpush.bf16.msra.mxu0 %v1231_v9  ;;  %v1235_v26 = vld [vmem:[%s1440_s29 + $0x48] sm:$0xff]  ;;  %v1234_v30 = vld [vmem:[%s1440_s29 + $0x40] sm:$0xff]  ;;  %v427_v38 = vld [vmem:[%s1430_s18 + $0x10] sm:$0xff] }
  0x2a   : > { %720 = vmatpush.bf16.msra.mxu1 %v1239_v10  ;;  %v1243_v27 = vld [vmem:[%s1440_s29 + $0x88] sm:$0xff]  ;;  %v1242_v31 = vld [vmem:[%s1440_s29 + $0x80] sm:$0xff]  ;;  %v424_v39 = vld [vmem:[%s1425_s15 + $0x18] sm:$0xff]  ;;  %v438_v43 = vpack.c.bf16 %v427_v38, %v423_v37 }
  0x2b   : > { %738 = vmatpush.bf16.msra.mxu2 %v1247_v11  ;;  %v1251_v28 = vld [vmem:[%s1440_s29 + $0xc8] sm:$0xff]  ;;  %v1250_v32 = vld [vmem:[%s1440_s29 + $0xc0] sm:$0xff]  ;;  %v428_v40 = vld [vmem:[%s1430_s18 + $0x18] sm:$0xff]  ;;  %s1221_s29 = sld [smem:[#allocation3 + $0x7]] (!%p1211_p10) }
  0x2c   : > { %756 = vmatpush.bf16.msra.mxu3 %v1255_v12  ;;  %v421_v33 = vld [vmem:[%s1425_s15] sm:$0xff]  ;;  %v422_v35 = vld [vmem:[%s1425_s15 + $0x8] sm:$0xff]  ;;  %v439_v44 = vpack.c.bf16 %v428_v40, %v424_v39  ;;  %v431_v47 = vld [vmem:[%s1435_s21 + $0x10] sm:$0xff] }
  0x2d   : > { %703 = vmatpush.bf16.msra.mxu0 %v1230_v13  ;;  %v425_v34 = vld [vmem:[%s1430_s18] sm:$0xff]  ;;  %v426_v36 = vld [vmem:[%s1430_s18 + $0x8] sm:$0xff]  ;;  %v432_v48 = vld [vmem:[%s1435_s21 + $0x18] sm:$0xff]  ;;  %v442_v51 = vpack.c.bf16 %v431_v47, %v431_v47  ;;  %s835_s18 = sld [smem:[#allocation3]] (!%p1211_p10) }
  0x2e   : > { %721 = vmatpush.bf16.msra.mxu1 %v1238_v14  ;;  %v436_v41 = vpack.c.bf16 %v425_v34, %v421_v33  ;;  %v437_v42 = vpack.c.bf16 %v426_v36, %v422_v35  ;;  %v429_v45 = vld [vmem:[%s1435_s21] sm:$0xff]  ;;  %v430_v46 = vld [vmem:[%s1435_s21 + $0x8] sm:$0xff]  ;;  %v443_v52 = vpack.c.bf16 %v432_v48, %v432_v48  ;;  %s1219_s21 = sld [smem:[#allocation3 + $0x5]] (!%p1211_p10) }
  0x2f   : > { %739 = vmatpush.bf16.msra.mxu2 %v1246_v15  ;;  %v440_v49 = vpack.c.bf16 %v429_v45, %v429_v45  ;;  %v441_v50 = vpack.c.bf16 %v430_v46, %v430_v46  ;;  %v433_v61 = vld [vmem:[#allocation2] sm:$0xff]  ;;  %v434_v6 = vld [vmem:[#allocation2 + $0x8] sm:$0xff]  ;;  %v435_v15 = vld [vmem:[#allocation2 + $0x10] sm:$0xff] }
  0x30   : > { %757 = vmatpush.bf16.msra.mxu3 %v1254_v16 }
  0x31   : > { %704 = vmatpush.bf16.msra.mxu0 %v1229_v17 }
  0x32   : > { %722 = vmatpush.bf16.msra.mxu1 %v1237_v18 }
  0x33   : > { %740 = vmatpush.bf16.msra.mxu2 %v1245_v19 }
  0x34   : > { %758 = vmatpush.bf16.msra.mxu3 %v1253_v20 }
  0x35   : > { %705 = vmatpush.bf16.msra.mxu0 %v1228_v21 }
  0x36   : > { %723 = vmatpush.bf16.msra.mxu1 %v1236_v22 }
  0x37   : > { %741 = vmatpush.bf16.msra.mxu2 %v1244_v23 }
  0x38   : > { %759 = vmatpush.bf16.msra.mxu3 %v1252_v24 }
  0x39   : > { %706 = vmatpush.bf16.msra.mxu0 %v1227_v25 }
  0x3a   : > { %724 = vmatpush.bf16.msra.mxu1 %v1235_v26 }
  0x3b   : > { %742 = vmatpush.bf16.msra.mxu2 %v1243_v27 }
  0x3c   : > { %760 = vmatpush.bf16.msra.mxu3 %v1251_v28 }
  0x3d   : > { %707 = vmatpush.bf16.msra.mxu0 %v1226_v29 }
  0x3e   : > { %725 = vmatpush.bf16.msra.mxu1 %v1234_v30 }
  0x3f   : > { %743 = vmatpush.bf16.msra.mxu2 %v1242_v31 }
  0x40   : > { %761 = vmatpush.bf16.msra.mxu3 %v1250_v32  ;;  %708 = vmatmul.bf16.vlgmr.msra.gmra.mxu0 %v436_v41 }
  0x41   : > { %726 = vmatmul.bf16.vlgmr.msra.gmra.mxu1 %v437_v42 }
  0x42   : > { %744 = vmatmul.bf16.vlgmr.msra.gmra.mxu2 %v438_v43 }
  0x43   : > { %762 = vmatmul.bf16.vlgmr.msra.gmra.mxu3 %v439_v44 }
  0x50   : > { %713 = vmatmul.bf16.gmra.mxu0 %v440_v49 }
  0x51   : > { %731 = vmatmul.bf16.gmra.mxu1 %v441_v50 }
  0x52   : > { %749 = vmatmul.bf16.gmra.mxu2 %v442_v51 }
  0x53   : > { %767 = vmatmul.bf16.gmra.mxu3 %v443_v52 }
  0xbd   : > { %v709_v53 = vpop.f32.mrf.mxu0 }
  0xbe   : > { %v727_v54 = vpop.f32.mrf.mxu1 }
  0xbf   : > { %v728_v55 = vadd.f32 %v727_v54, %v709_v53 }
  0xc5   : > { %v745_v56 = vpop.f32.mrf.mxu2  ;;  %v711_v59 = vpop.f32.mrf.mxu0 }
  0xc6   : > { %v763_v57 = vpop.f32.mrf.mxu3  ;;  %v746_v58 = vadd.f32 %v745_v56, %v728_v55  ;;  %v729_v60 = vpop.f32.mrf.mxu1 }
  0xc7   : > { %v730_v0 = vadd.f32 %v729_v60, %v711_v59 }
  0xc8   : > { %v764_v62 = vadd.f32 %v763_v57, %v746_v58 }
  0xca   : > { %v772_v63 = vadd.f32 %v764_v62, %v433_v61 }
  0xcc   : > { %776 = vst.msk [vmem:[#allocation2] sm:$0xff] %vm775_vm1, %v772_v63 }
  0xcd   : > { %v747_v1 = vpop.f32.mrf.mxu2  ;;  %v714_v4 = vpop.f32.mrf.mxu0 }
  0xce   : > { %v765_v2 = vpop.f32.mrf.mxu3  ;;  %v748_v3 = vadd.f32 %v747_v1, %v730_v0  ;;  %v732_v5 = vpop.f32.mrf.mxu1 }
  0xcf   : > { %v733_v9 = vadd.f32 %v732_v5, %v714_v4 }
  0xd0   : > { %v766_v7 = vadd.f32 %v765_v2, %v748_v3 }
  0xd2   : > { %v773_v8 = vadd.f32 %v766_v7, %v434_v6 }
  0xd4   : > { %777 = vst.msk [vmem:[#allocation2 + $0x8] sm:$0xff] %vm775_vm1, %v773_v8 }
  0xd5   : > { %v750_v10 = vpop.f32.mrf.mxu2  ;;  %v716_v13 = vpop.f32.mrf.mxu0 }
  0xd6   : > { %v768_v11 = vpop.f32.mrf.mxu3  ;;  %v751_v12 = vadd.f32 %v750_v10, %v733_v9  ;;  %v734_v14 = vpop.f32.mrf.mxu1 }
  0xd8   : > { %v769_v16 = vadd.f32 %v768_v11, %v751_v12 }
  0xda   : > { %v774_v17 = vadd.f32 %v769_v16, %v435_v15  ;;  %782 = sbr.rel (%p1211_p10) target bundleno = 614 (0x266), region = 60 }
  0xdc   : > { %778 = vst.msk [vmem:[#allocation2 + $0x10] sm:$0xff] %vm775_vm1, %v774_v17 }
  0xdd   : > { %v752_v18 = vpop.f32.mrf.mxu2 }
  0xde   : > { %v770_v19 = vpop.f32.mrf.mxu3 }
  0xdf   : > { %v799_v20 = vld [vmem:[%s1533_s6 + $0x18] sm:$0xff]  ;;  %v798_v21 = vld [vmem:[%s1533_s6 + $0x10] sm:$0xff]  ;;  %v797_v22 = vld [vmem:[%s1533_s6 + $0x8] sm:$0xff]  ;;  %v844_v34 = vstv %s1215_s17  ;;  %vm935_vm2 = vcmask 7168   ;;  %vm937_vm3 = vcmask 15360   ;;  %vm939_vm4 = vcmask 23552  }
  0xe0   : > { %821 = vmatpush.msra.mxu0 %v799_v20  ;;  %1258 = vmatpush.msra.mxu1 %v799_v20  ;;  %v783_v23 = vld [vmem:[#allocation2] sm:$0xff]  ;;  %v784_v25 = vld [vmem:[#allocation2 + $0x8] sm:$0xff]  ;;  %v848_v35 = vstv %s1216_s16  ;;  %v858_v40 = vstv %s835_s18  ;;  %v898_v1 = vstv %s1509_s19  ;;  %v885_v3 = vstv %s1511_s20 }
  0xe1   : > { %1259 = vmatpush.msra.mxu2 %v799_v20  ;;  %v1306_v24 = vld [vmem:[%s1532_s5] ss:$0 sm:$0xff]  ;;  %v887_v18 = vstv %s1219_s21  ;;  %vm941_vm5 = vcmask 31744  }
  0xe2   : > { %822 = vmatpush.msra.mxu0 %v798_v21  ;;  %1260 = vmatpush.msra.mxu1 %v798_v21  ;;  %v796_v27 = vld [vmem:[%s1533_s6] sm:$0xff]  ;;  %v790_v28 = vadd.f32 %v1306_v24, %v783_v23  ;;  %v791_v29 = vadd.f32 %v1306_v24, %v784_v25 }
  0xe3   : > { %v785_v26 = vld [vmem:[#allocation2 + $0x10] sm:$0xff]  ;;  %1261 = vmatpush.msra.mxu2 %v798_v21  ;;  %v896_v21 = vstv %s1218_s23 }
  0xe4   : > { %v792_v30 = vadd.f32 %v1306_v24, %v785_v26  ;;  %823 = vmatpush.msra.mxu0 %v797_v22  ;;  %1262 = vmatpush.msra.mxu1 %v797_v22  ;;  %v793_v31 = vmax.f32 %v790_v28, 0.0  ;;  %v794_v32 = vmax.f32 %v791_v29, 0.0  ;;  %v905_v24 = vstv %s1222_s27 }
  0xe5   : > { %1263 = vmatpush.msra.mxu2 %v797_v22 }
  0xe6   : > { %v795_v33 = vmax.f32 %v792_v30, 0.0  ;;  %824 = vmatpush.msra.mxu0 %v796_v27  ;;  %1264 = vmatpush.msra.mxu1 %v796_v27 }
  0xe7   : > { %1265 = vmatpush.msra.mxu2 %v796_v27  ;;  %1212 = vmatmul.msk.f32.vlgmr.msra.gmra.mxu0 %vm775_vm1, %v793_v31 }
  0xe8   : > { %1213 = vmatmul.msk.f32.vlgmr.msra.gmra.mxu1 %vm775_vm1, %v794_v32  ;;  %1214 = vmatmul.msk.f32.vlgmr.msra.gmra.mxu2 %vm775_vm1, %v795_v33  ;;  %v894_v33 = vstv %s1221_s29 }
 0x164   : > { %v826_v36 = vpop.f32.mrf.mxu0 }
 0x165   : > { %v845_v37 = vadd.f32 %v844_v34, %v826_v36  ;;  %v849_v38 = vadd.f32 %v848_v35, %v826_v36  ;;  %v829_v39 = vpop.f32.mrf.mxu1 }
 0x166   : > { %v846_v41 = vadd.f32 %v844_v34, %v829_v39  ;;  %v850_v42 = vadd.f32 %v848_v35, %v829_v39 }
 0x167   : > { %v852_v43 = vmax.f32 %v845_v37, 0.0  ;;  %v855_v44 = vmin.f32 %v845_v37, 0.0  ;;  %v865_v45 = vmax.f32 %v849_v38, 0.0  ;;  %v868_v46 = vmin.f32 %v849_v38, 0.0 }
 0x168   : > { %v853_v47 = vmax.f32 %v846_v41, 0.0  ;;  %v856_v48 = vmin.f32 %v846_v41, 0.0  ;;  %v866_v49 = vmax.f32 %v850_v42, 0.0  ;;  %v869_v50 = vmin.f32 %v850_v42, 0.0 }
 0x169   : > { %v859_v51 = vmul.f32 %v858_v40, %v855_v44  ;;  %v871_v52 = vmul.f32 %v868_v46, %v858_v40 }
 0x16a   : > { %v860_v53 = vmul.f32 %v858_v40, %v856_v48  ;;  %v872_v54 = vmul.f32 %v869_v50, %v858_v40 }
 0x16b   : > { %v862_v55 = vadd.f32 %v859_v51, %v852_v43  ;;  %v874_v56 = vadd.f32 %v871_v52, %v865_v45  ;;  %v832_v57 = vpop.f32.mrf.mxu2 }
 0x16c   : > { %v863_v58 = vadd.f32 %v860_v53, %v853_v47  ;;  %v875_v59 = vadd.f32 %v872_v54, %v866_v49  ;;  %v847_v60 = vadd.f32 %v844_v34, %v832_v57  ;;  %v851_v61 = vadd.f32 %v848_v35, %v832_v57 }
 0x16e   : > { %v857_v62 = vmin.f32 %v847_v60, 0.0  ;;  %v870_v63 = vmin.f32 %v851_v61, 0.0  ;;  %v879_v0 = vsub.f32 %v875_v59, %v874_v56  ;;  %v877_v2 = vsub.f32 %v863_v58, %v862_v55 }
 0x16f   : > { %v854_v4 = vmax.f32 %v847_v60, 0.0  ;;  %v867_v6 = vmax.f32 %v851_v61, 0.0 }
 0x170   : > { %v861_v5 = vmul.f32 %v858_v40, %v857_v62  ;;  %v873_v7 = vmul.f32 %v870_v63, %v858_v40  ;;  %v880_v8 = vand.u32 2147483647, %v879_v0  ;;  %v878_v9 = vand.u32 2147483647, %v877_v2 }
 0x172   : > { %v864_v10 = vadd.f32 %v861_v5, %v854_v4  ;;  %v876_v11 = vadd.f32 %v873_v7, %v867_v6  ;;  %v899_v12 = vmul.f32 %v898_v1, %v880_v8  ;;  %v886_v13 = vmul.f32 %v885_v3, %v878_v9 }
 0x173   : > { %v888_v20 = vmul.f32 %v887_v18, %v880_v8  ;;  %v897_v22 = vmul.f32 %v896_v21, %v878_v9 }
 0x174   : > { %v883_v14 = vsub.f32 %v876_v11, %v874_v56  ;;  %v881_v15 = vsub.f32 %v864_v10, %v862_v55  ;;  %901 = vrot.lane.b32.xlu0 %v899_v12, %s1352_s22 }
 0x176   : > { %v884_v16 = vand.u32 2147483647, %v883_v14  ;;  %v882_v25 = vand.u32 2147483647, %v881_v15 }
 0x178   : > { %v916_v17 = vmul.f32 %v898_v1, %v884_v16  ;;  %v908_v19 = vmul.f32 %v887_v18, %v884_v16  ;;  %v915_v28 = vmul.f32 %v896_v21, %v882_v25  ;;  %v907_v31 = vmul.f32 %v885_v3, %v882_v25 }
 0x17a   : > { %918 = vrot.lane.b32.xlu1 %v916_v17, %s1352_s22 }
 0x17c   : > { %910 = vrot.lane.b32.xlu0 %v908_v19, %s1352_s22 }
 0x182   : > { %890 = vrot.lane.b32.xlu1 %v888_v20, %s1352_s22 }
 0x1e6   : > { %v902_v23 = vpop.permute.xlu0 %901 }
 0x1e7   : > { %v904_v26 = vadd.f32 %v902_v23, %v897_v22 }
 0x1e9   : > { %v906_v27 = vadd.f32 %v905_v24, %v904_v26 }
 0x1eb   : > { %924 = vrot.lane.b32.xlu2 %v906_v27, %s1353_s30 }
 0x1ec   : > { %v919_v29 = vpop.permute.xlu1 %918 }
 0x1ed   : > { %v921_v30 = vadd.f32 %v919_v29, %v915_v28 }
 0x1ee   : > { %v911_v34 = vpop.permute.xlu0 %910 }
 0x1ef   : > { %v922_v32 = vadd.f32 %v921_v30, %v905_v24  ;;  %v913_v35 = vadd.f32 %v911_v34, %v907_v31 }
 0x1f1   : > { %932 = vrot.lane.b32.xlu0 %v922_v32, %s1354_s8  ;;  %v914_v36 = vadd.f32 %v913_v35, %v894_v33 }
 0x1f3   : > { %928 = vrot.lane.b32.xlu2 %v914_v36, %s1355_s9 }
 0x1f4   : > { %v891_v37 = vpop.permute.xlu1 %890 }
 0x1f5   : > { %v893_v38 = vadd.f32 %v891_v37, %v886_v13 }
 0x1f7   : > { %v895_v39 = vadd.f32 %v894_v33, %v893_v38 }
 0x245   : > { %v925_v40 = vpop.permute.xlu2 %924 }
 0x246   : > { %v936_v42 = vsel %vm935_vm2, %v895_v39, %v925_v40 }
 0x24d   : > { %v929_v41 = vpop.permute.xlu2 %928 }
 0x24e   : > { %v938_v43 = vsel %vm937_vm3, %v936_v42, %v929_v41 }
 0x263   : > { %v933_v44 = vpop.permute.xlu0 %932 }
 0x264   : > { %v940_v45 = vsel %vm939_vm4, %v938_v43, %v933_v44 }
 0x265   : > { %942 = vst.msk [vmem:[%s1534_s7] sm:$0xff] %vm941_vm5, %v940_v45 }
 0x266 PF: > { %s18_s26 = sadd.s32 1, %s1348_s26   ;;  %s1535_s24 = smov %s1344_s25 }
 0x267   : > { %p15_p11 = scmp.ge.s32.totalorder %s18_s26, 4   ;;  %s1536_s25 = smov %s1538_s28 }
 0x269   :  { %17 = sbr.rel (!%p15_p11) target bundleno = 2 (0x2), region = 100 }
 0x26e   :  { %962 = vsyncpa [#allocation4], 1 }
 0x26f   :  { %964 = vsyncpa [#allocation4 + $0x1], 1 }

</bundles_post_ra>
